<compile_context>
chip_gen: v7x
topology: tpu7x:2x2x1
jax: 0.10.0
libtpu: 0.0.40
codegen_flags: <defaults>
</compile_context>

<pallas_src>
import jax
import jax.numpy as jnp
from jax.experimental import pallas as pl
from jax.experimental.pallas import tpu as pltpu

NUM_INPUTS = 32
NUM_OUTPUTS = 9                        # len(scale_switches) -> num_outputs = 9
HIDDENS = [64, 128, 256, 128, 64]      # layers_per_side=3, base_nodes=64
NUM_LAYERS = 6
SWITCH_SCALAR = 0.5
NEG_BIG = -1e30                        # pad-lane bias -> exp() underflows to 0

REAL_DIMS = [NUM_INPUTS] + HIDDENS + [NUM_OUTPUTS]          # 32,64,128,256,128,64,9


def _round_up(n, m):
    return (n + m - 1) // m * m


# Per-layer minimal padding: input stays 32 (full-dim block), every other
# feature dim is padded up to the next multiple of 128 lanes.
PADDED_DIMS = [NUM_INPUTS] + [_round_up(d, 128) for d in REAL_DIMS[1:]]
# -> [32, 128, 128, 256, 128, 128, 128]
OUT_PAD = PADDED_DIMS[-1]              # lane-dense 128-wide output slab
TILE_GRAN = 16                         # bf16 sublane granule (also fine for f32)


def pokenet_kernel(x_ref, *refs):
    """One batch tile: 6 dense layers (bf16 MXU, f32 acc) + lane-dense softmax."""
    w_refs = refs[:NUM_LAYERS]
    b_refs = refs[NUM_LAYERS:2 * NUM_LAYERS]
    out_ref = refs[2 * NUM_LAYERS]

    h = x_ref[...]                                            # (tile_b, 32) bf16
    for layer in range(NUM_LAYERS):                           # static unroll
        z = jnp.dot(h, w_refs[layer][...],
                    preferred_element_type=jnp.float32) + b_refs[layer][...]
        if layer < NUM_LAYERS - 1:
            h = jnp.maximum(z, 0.0).astype(jnp.bfloat16)      # next MXU operand
        else:
            h = z                                             # (tile_b, 128) f32 logits

    # Softmax over 128 lanes; pad lanes carry a -1e30 bias (f32) so exp -> 0.
    m = jnp.max(h, axis=-1, keepdims=True)
    e = jnp.exp(h - m)
    denom = jnp.sum(e, axis=-1, keepdims=True)
    out_ref[...] = e * pl.reciprocal(denom, approx=True)


def init_params(key):
    """PyTorch nn.Linear-style init: U(-1/sqrt(fan_in), 1/sqrt(fan_in))."""
    params = []
    for i in range(len(REAL_DIMS) - 1):
        key, kw, kb = jax.random.split(key, 3)
        bound = 1.0 / (REAL_DIMS[i] ** 0.5)
        w = jax.random.uniform(kw, (REAL_DIMS[i], REAL_DIMS[i + 1]),
                               jnp.float32, -bound, bound)
        b = jax.random.uniform(kb, (1, REAL_DIMS[i + 1]), jnp.float32, -bound, bound)
        params.append((w, b))
    return params


def pack_params(params, scale):
    """Fold scale into the last layer, per-layer minimal zero-padding.

    Returns 6 bf16 weights and 6 f32 biases (last-layer pad lanes get -1e30).
    """
    ws, bs = [], []
    for i, (w, b) in enumerate(params):
        last = (i == len(params) - 1)
        if last:
            w = w * scale                          # column-wise scale fold
            b = b * scale
        kin, kout = PADDED_DIMS[i], PADDED_DIMS[i + 1]
        w_pad = jnp.zeros((kin, kout), jnp.float32).at[:w.shape[0], :w.shape[1]].set(w)
        bias_fill = NEG_BIG if last else 0.0       # kill pad logit lanes in softmax
        b_pad = jnp.full((1, kout), bias_fill, jnp.float32).at[:, :b.shape[1]].set(b)
        ws.append(w_pad.astype(jnp.bfloat16))
        bs.append(b_pad)                           # biases stay f32 (-1e30 exact)
    return tuple(ws), tuple(bs)


def pokenet_forward(x, ws, bs, *, tile_b=1024):
    batch = x.shape[0]
    # Cap tile_b so the batch grid has >=2 steps whenever the batch allows
    # (v7x megacore sharding via dimension_semantics); keep multiples of 16.
    tile_b = min(tile_b, _round_up(pl.cdiv(batch, 2), TILE_GRAN))
    tile_b = max(TILE_GRAN, _round_up(tile_b, TILE_GRAN))
    padded_batch = _round_up(batch, tile_b)

    x_bf = x.astype(jnp.bfloat16)                  # bf16 stream: halves x HBM read
    if padded_batch != batch:
        # Only the remainder tile is padded; at 32 bf16 lanes this copy is tiny.
        x_bf = jnp.pad(x_bf, ((0, padded_batch - batch), (0, 0)))

    in_specs = [pl.BlockSpec((tile_b, NUM_INPUTS), lambda i: (i, 0))]        # x tile
    in_specs += [pl.BlockSpec(w.shape, lambda i: (0, 0)) for w in ws]        # resident
    in_specs += [pl.BlockSpec(b.shape, lambda i: (0, 0)) for b in bs]        # resident

    out = pl.pallas_call(
        pokenet_kernel,
        out_shape=jax.ShapeDtypeStruct((padded_batch, OUT_PAD), jnp.float32),
        grid_spec=pltpu.PrefetchScalarGridSpec(
            num_scalar_prefetch=0,
            grid=(padded_batch // tile_b,),
            in_specs=in_specs,
            out_specs=pl.BlockSpec((tile_b, OUT_PAD), lambda i: (i, 0)),
        ),
        compiler_params=pltpu.CompilerParams(
            dimension_semantics=("parallel",)),    # both TCs on v7x
    )(x_bf, *ws, *bs)

    return out[:batch, :NUM_OUTPUTS]


def pokenet_reference(x, params, scale):
    """Pure-JAX f32 reference matching the PyTorch module semantics."""
    h = x
    for i, (w, b) in enumerate(params):
        h = h @ w + b
        if i < len(params) - 1:
            h = jnp.maximum(h, 0.0)
    return jax.nn.softmax(h * scale, axis=-1)


if __name__ == "__main__":
    key = jax.random.PRNGKey(0)
    kx, kp = jax.random.split(key)

    params = init_params(kp)
    scale = jnp.array(
        [[1, 1, 1, 1, SWITCH_SCALAR, SWITCH_SCALAR, SWITCH_SCALAR, SWITCH_SCALAR,
          SWITCH_SCALAR]], dtype=jnp.float32)
    ws, bs = pack_params(params, scale)

    # Small demo: batch=20 exercises the >=2-step grid and the remainder pad.
    batch = 20
    x = jax.random.normal(kx, (batch, NUM_INPUTS), dtype=jnp.float32)

    out = jax.block_until_ready(pokenet_forward(x, ws, bs))
    ref = pokenet_reference(x, params, scale)

    assert out.shape == (batch, NUM_OUTPUTS)
    # bf16 matmul operands (f32 accumulation) -> relaxed tolerance vs. f32 reference.
    assert jnp.allclose(out, ref, atol=3e-2), "mismatch vs f32 reference (bf16 tol)"
    assert jnp.allclose(jnp.sum(out, axis=-1), 1.0, atol=5e-3), "rows must sum to ~1"

    # Divisible batch (no remainder pad), still 2 grid steps.
    x2 = jax.random.normal(jax.random.PRNGKey(1), (64, NUM_INPUTS), dtype=jnp.float32)
    out2 = jax.block_until_ready(pokenet_forward(x2, ws, bs))
    ref2 = pokenet_reference(x2, params, scale)
    assert jnp.allclose(out2, ref2, atol=3e-2), "mismatch vs f32 reference (divisible)"

    print("KERNEL_OK")
</pallas_src>

<mosaic_0001>
module attributes {stable_mosaic.version = 11 : i64} {
  func.func @pokenet_kernel(%arg0: i32, %arg1: memref<16x32xbf16, #tpu.memory_space<vmem>>, %arg2: memref<32x128xbf16, #tpu.memory_space<vmem>>, %arg3: memref<128x128xbf16, #tpu.memory_space<vmem>>, %arg4: memref<128x256xbf16, #tpu.memory_space<vmem>>, %arg5: memref<256x128xbf16, #tpu.memory_space<vmem>>, %arg6: memref<128x128xbf16, #tpu.memory_space<vmem>>, %arg7: memref<128x128xbf16, #tpu.memory_space<vmem>>, %arg8: memref<1x128xf32, #tpu.memory_space<vmem>>, %arg9: memref<1x128xf32, #tpu.memory_space<vmem>>, %arg10: memref<1x256xf32, #tpu.memory_space<vmem>>, %arg11: memref<1x128xf32, #tpu.memory_space<vmem>>, %arg12: memref<1x128xf32, #tpu.memory_space<vmem>>, %arg13: memref<1x128xf32, #tpu.memory_space<vmem>>, %arg14: memref<16x128xf32, #tpu.memory_space<vmem>>) attributes {dimension_semantics = [#tpu.dimension_semantics<parallel>], iteration_bounds = array<i64: 2>, scalar_prefetch = 0 : i64, scratch_operands = 0 : i64, tpu.core_type = #tpu.core_type<tc>, window_params = [{transform_indices = @transform_0, window_bounds = array<i64: 16, 32>}, {pipeline_mode = #tpu.pipeline_mode<synchronous>, transform_indices = @transform_1, window_bounds = array<i64: 32, 128>}, {pipeline_mode = #tpu.pipeline_mode<synchronous>, transform_indices = @transform_2, window_bounds = array<i64: 128, 128>}, {pipeline_mode = #tpu.pipeline_mode<synchronous>, transform_indices = @transform_3, window_bounds = array<i64: 128, 256>}, {pipeline_mode = #tpu.pipeline_mode<synchronous>, transform_indices = @transform_4, window_bounds = array<i64: 256, 128>}, {pipeline_mode = #tpu.pipeline_mode<synchronous>, transform_indices = @transform_5, window_bounds = array<i64: 128, 128>}, {pipeline_mode = #tpu.pipeline_mode<synchronous>, transform_indices = @transform_6, window_bounds = array<i64: 128, 128>}, {pipeline_mode = #tpu.pipeline_mode<synchronous>, transform_indices = @transform_7, window_bounds = array<i64: 1, 128>}, {pipeline_mode = #tpu.pipeline_mode<synchronous>, transform_indices = @transform_8, window_bounds = array<i64: 1, 128>}, {pipeline_mode = #tpu.pipeline_mode<synchronous>, transform_indices = @transform_9, window_bounds = array<i64: 1, 256>}, {pipeline_mode = #tpu.pipeline_mode<synchronous>, transform_indices = @transform_10, window_bounds = array<i64: 1, 128>}, {pipeline_mode = #tpu.pipeline_mode<synchronous>, transform_indices = @transform_11, window_bounds = array<i64: 1, 128>}, {pipeline_mode = #tpu.pipeline_mode<synchronous>, transform_indices = @transform_12, window_bounds = array<i64: 1, 128>}, {transform_indices = @transform_13, window_bounds = array<i64: 16, 128>}]} {
    %c0 = arith.constant 0 : index
    %c0_0 = arith.constant 0 : index
    %0 = vector.load %arg1[%c0, %c0_0] : memref<16x32xbf16, #tpu.memory_space<vmem>>, vector<16x32xbf16>
    %c0_1 = arith.constant 0 : index
    %c0_2 = arith.constant 0 : index
    %1 = vector.load %arg2[%c0_1, %c0_2] : memref<32x128xbf16, #tpu.memory_space<vmem>>, vector<32x128xbf16>
    %cst = arith.constant dense<0.000000e+00> : vector<16x128xf32>
    %2 = tpu.matmul %0, %1, %cst {dimension_numbers = #tpu.dot_dimension_numbers<[1], [0], [0], [1], [0, 0, 1, 1], [], []>} : vector<16x32xbf16>, vector<32x128xbf16>, vector<16x128xf32> -> vector<16x128xf32>
    %c0_3 = arith.constant 0 : index
    %c0_4 = arith.constant 0 : index
    %3 = vector.load %arg8[%c0_3, %c0_4] : memref<1x128xf32, #tpu.memory_space<vmem>>, vector<1x128xf32>
    %4 = vector.broadcast %3 : vector<1x128xf32> to vector<16x128xf32>
    %5 = arith.addf %2, %4 : vector<16x128xf32>
    %cst_5 = arith.constant 0.000000e+00 : f32
    %6 = vector.broadcast %cst_5 : f32 to vector<16x128xf32>
    %7 = arith.maximumf %5, %6 : vector<16x128xf32>
    %8 = arith.truncf %7 : vector<16x128xf32> to vector<16x128xbf16>
    %c0_6 = arith.constant 0 : index
    %c0_7 = arith.constant 0 : index
    %9 = vector.load %arg3[%c0_6, %c0_7] : memref<128x128xbf16, #tpu.memory_space<vmem>>, vector<128x128xbf16>
    %cst_8 = arith.constant dense<0.000000e+00> : vector<16x128xf32>
    %10 = tpu.matmul %8, %9, %cst_8 {dimension_numbers = #tpu.dot_dimension_numbers<[1], [0], [0], [1], [0, 0, 1, 1], [], []>} : vector<16x128xbf16>, vector<128x128xbf16>, vector<16x128xf32> -> vector<16x128xf32>
    %c0_9 = arith.constant 0 : index
    %c0_10 = arith.constant 0 : index
    %11 = vector.load %arg9[%c0_9, %c0_10] : memref<1x128xf32, #tpu.memory_space<vmem>>, vector<1x128xf32>
    %12 = vector.broadcast %11 : vector<1x128xf32> to vector<16x128xf32>
    %13 = arith.addf %10, %12 : vector<16x128xf32>
    %cst_11 = arith.constant 0.000000e+00 : f32
    %14 = vector.broadcast %cst_11 : f32 to vector<16x128xf32>
    %15 = arith.maximumf %13, %14 : vector<16x128xf32>
    %16 = arith.truncf %15 : vector<16x128xf32> to vector<16x128xbf16>
    %c0_12 = arith.constant 0 : index
    %c0_13 = arith.constant 0 : index
    %17 = vector.load %arg4[%c0_12, %c0_13] : memref<128x256xbf16, #tpu.memory_space<vmem>>, vector<128x256xbf16>
    %cst_14 = arith.constant dense<0.000000e+00> : vector<16x256xf32>
    %18 = tpu.matmul %16, %17, %cst_14 {dimension_numbers = #tpu.dot_dimension_numbers<[1], [0], [0], [1], [0, 0, 1, 1], [], []>} : vector<16x128xbf16>, vector<128x256xbf16>, vector<16x256xf32> -> vector<16x256xf32>
    %c0_15 = arith.constant 0 : index
    %c0_16 = arith.constant 0 : index
    %19 = vector.load %arg10[%c0_15, %c0_16] : memref<1x256xf32, #tpu.memory_space<vmem>>, vector<1x256xf32>
    %20 = vector.broadcast %19 : vector<1x256xf32> to vector<16x256xf32>
    %21 = arith.addf %18, %20 : vector<16x256xf32>
    %cst_17 = arith.constant 0.000000e+00 : f32
    %22 = vector.broadcast %cst_17 : f32 to vector<16x256xf32>
    %23 = arith.maximumf %21, %22 : vector<16x256xf32>
    %24 = arith.truncf %23 : vector<16x256xf32> to vector<16x256xbf16>
    %c0_18 = arith.constant 0 : index
    %c0_19 = arith.constant 0 : index
    %25 = vector.load %arg5[%c0_18, %c0_19] : memref<256x128xbf16, #tpu.memory_space<vmem>>, vector<256x128xbf16>
    %cst_20 = arith.constant dense<0.000000e+00> : vector<16x128xf32>
    %26 = tpu.matmul %24, %25, %cst_20 {dimension_numbers = #tpu.dot_dimension_numbers<[1], [0], [0], [1], [0, 0, 1, 1], [], []>} : vector<16x256xbf16>, vector<256x128xbf16>, vector<16x128xf32> -> vector<16x128xf32>
    %c0_21 = arith.constant 0 : index
    %c0_22 = arith.constant 0 : index
    %27 = vector.load %arg11[%c0_21, %c0_22] : memref<1x128xf32, #tpu.memory_space<vmem>>, vector<1x128xf32>
    %28 = vector.broadcast %27 : vector<1x128xf32> to vector<16x128xf32>
    %29 = arith.addf %26, %28 : vector<16x128xf32>
    %cst_23 = arith.constant 0.000000e+00 : f32
    %30 = vector.broadcast %cst_23 : f32 to vector<16x128xf32>
    %31 = arith.maximumf %29, %30 : vector<16x128xf32>
    %32 = arith.truncf %31 : vector<16x128xf32> to vector<16x128xbf16>
    %c0_24 = arith.constant 0 : index
    %c0_25 = arith.constant 0 : index
    %33 = vector.load %arg6[%c0_24, %c0_25] : memref<128x128xbf16, #tpu.memory_space<vmem>>, vector<128x128xbf16>
    %cst_26 = arith.constant dense<0.000000e+00> : vector<16x128xf32>
    %34 = tpu.matmul %32, %33, %cst_26 {dimension_numbers = #tpu.dot_dimension_numbers<[1], [0], [0], [1], [0, 0, 1, 1], [], []>} : vector<16x128xbf16>, vector<128x128xbf16>, vector<16x128xf32> -> vector<16x128xf32>
    %c0_27 = arith.constant 0 : index
    %c0_28 = arith.constant 0 : index
    %35 = vector.load %arg12[%c0_27, %c0_28] : memref<1x128xf32, #tpu.memory_space<vmem>>, vector<1x128xf32>
    %36 = vector.broadcast %35 : vector<1x128xf32> to vector<16x128xf32>
    %37 = arith.addf %34, %36 : vector<16x128xf32>
    %cst_29 = arith.constant 0.000000e+00 : f32
    %38 = vector.broadcast %cst_29 : f32 to vector<16x128xf32>
    %39 = arith.maximumf %37, %38 : vector<16x128xf32>
    %40 = arith.truncf %39 : vector<16x128xf32> to vector<16x128xbf16>
    %c0_30 = arith.constant 0 : index
    %c0_31 = arith.constant 0 : index
    %41 = vector.load %arg7[%c0_30, %c0_31] : memref<128x128xbf16, #tpu.memory_space<vmem>>, vector<128x128xbf16>
    %cst_32 = arith.constant dense<0.000000e+00> : vector<16x128xf32>
    %42 = tpu.matmul %40, %41, %cst_32 {dimension_numbers = #tpu.dot_dimension_numbers<[1], [0], [0], [1], [0, 0, 1, 1], [], []>} : vector<16x128xbf16>, vector<128x128xbf16>, vector<16x128xf32> -> vector<16x128xf32>
    %c0_33 = arith.constant 0 : index
    %c0_34 = arith.constant 0 : index
    %43 = vector.load %arg13[%c0_33, %c0_34] : memref<1x128xf32, #tpu.memory_space<vmem>>, vector<1x128xf32>
    %44 = vector.broadcast %43 : vector<1x128xf32> to vector<16x128xf32>
    %45 = arith.addf %42, %44 : vector<16x128xf32>
    %cst_35 = arith.constant dense<0xFF800000> : vector<16xf32>
    %46 = vector.multi_reduction <maximumf>, %45, %cst_35 [1] : vector<16x128xf32> to vector<16xf32>
    %47 = vector.shape_cast %46 : vector<16xf32> to vector<16x1xf32>
    %48 = vector.broadcast %47 : vector<16x1xf32> to vector<16x128xf32>
    %49 = arith.subf %45, %48 : vector<16x128xf32>
    %50 = math.exp %49 : vector<16x128xf32>
    %cst_36 = arith.constant dense<0.000000e+00> : vector<16xf32>
    %51 = vector.multi_reduction <add>, %50, %cst_36 [1] : vector<16x128xf32> to vector<16xf32>
    %52 = vector.shape_cast %51 : vector<16xf32> to vector<16x1xf32>
    %53 = tpu.reciprocal %52 {approx = true} : vector<16x1xf32> -> vector<16x1xf32>
    %54 = vector.broadcast %53 : vector<16x1xf32> to vector<16x128xf32>
    %55 = arith.mulf %50, %54 : vector<16x128xf32>
    %c0_37 = arith.constant 0 : index
    %c0_38 = arith.constant 0 : index
    %56 = vector.load %arg14[%c0_37, %c0_38] : memref<16x128xf32, #tpu.memory_space<vmem>>, vector<16x128xf32>
    tpu.vector_store %arg14[%c0_37, %c0_38], %55 {strides = array<i32>} : memref<16x128xf32, #tpu.memory_space<vmem>>, vector<16x128xf32>,
    return
  }
  func.func @transform_0(%arg0: i32) -> (i32, i32) {
    %c0_i32 = arith.constant 0 : i32
    %c0_i32_0 = arith.constant 0 : i32
    return %arg0, %c0_i32 : i32, i32
  }
  func.func @transform_1(%arg0: i32) -> (i32, i32) {
    %c0_i32 = arith.constant 0 : i32
    %c0_i32_0 = arith.constant 0 : i32
    %c0_i32_1 = arith.constant 0 : i32
    return %c0_i32, %c0_i32_0 : i32, i32
  }
  func.func @transform_2(%arg0: i32) -> (i32, i32) {
    %c0_i32 = arith.constant 0 : i32
    %c0_i32_0 = arith.constant 0 : i32
    %c0_i32_1 = arith.constant 0 : i32
    return %c0_i32, %c0_i32_0 : i32, i32
  }
  func.func @transform_3(%arg0: i32) -> (i32, i32) {
    %c0_i32 = arith.constant 0 : i32
    %c0_i32_0 = arith.constant 0 : i32
    %c0_i32_1 = arith.constant 0 : i32
    return %c0_i32, %c0_i32_0 : i32, i32
  }
  func.func @transform_4(%arg0: i32) -> (i32, i32) {
    %c0_i32 = arith.constant 0 : i32
    %c0_i32_0 = arith.constant 0 : i32
    %c0_i32_1 = arith.constant 0 : i32
    return %c0_i32, %c0_i32_0 : i32, i32
  }
  func.func @transform_5(%arg0: i32) -> (i32, i32) {
    %c0_i32 = arith.constant 0 : i32
    %c0_i32_0 = arith.constant 0 : i32
    %c0_i32_1 = arith.constant 0 : i32
    return %c0_i32, %c0_i32_0 : i32, i32
  }
  func.func @transform_6(%arg0: i32) -> (i32, i32) {
    %c0_i32 = arith.constant 0 : i32
    %c0_i32_0 = arith.constant 0 : i32
    %c0_i32_1 = arith.constant 0 : i32
    return %c0_i32, %c0_i32_0 : i32, i32
  }
  func.func @transform_7(%arg0: i32) -> (i32, i32) {
    %c0_i32 = arith.constant 0 : i32
    %c0_i32_0 = arith.constant 0 : i32
    %c0_i32_1 = arith.constant 0 : i32
    return %c0_i32, %c0_i32_0 : i32, i32
  }
  func.func @transform_8(%arg0: i32) -> (i32, i32) {
    %c0_i32 = arith.constant 0 : i32
    %c0_i32_0 = arith.constant 0 : i32
    %c0_i32_1 = arith.constant 0 : i32
    return %c0_i32, %c0_i32_0 : i32, i32
  }
  func.func @transform_9(%arg0: i32) -> (i32, i32) {
    %c0_i32 = arith.constant 0 : i32
    %c0_i32_0 = arith.constant 0 : i32
    %c0_i32_1 = arith.constant 0 : i32
    return %c0_i32, %c0_i32_0 : i32, i32
  }
  func.func @transform_10(%arg0: i32) -> (i32, i32) {
    %c0_i32 = arith.constant 0 : i32
    %c0_i32_0 = arith.constant 0 : i32
    %c0_i32_1 = arith.constant 0 : i32
    return %c0_i32, %c0_i32_0 : i32, i32
  }
  func.func @transform_11(%arg0: i32) -> (i32, i32) {
    %c0_i32 = arith.constant 0 : i32
    %c0_i32_0 = arith.constant 0 : i32
    %c0_i32_1 = arith.constant 0 : i32
    return %c0_i32, %c0_i32_0 : i32, i32
  }
  func.func @transform_12(%arg0: i32) -> (i32, i32) {
    %c0_i32 = arith.constant 0 : i32
    %c0_i32_0 = arith.constant 0 : i32
    %c0_i32_1 = arith.constant 0 : i32
    return %c0_i32, %c0_i32_0 : i32, i32
  }
  func.func @transform_13(%arg0: i32) -> (i32, i32) {
    %c0_i32 = arith.constant 0 : i32
    %c0_i32_0 = arith.constant 0 : i32
    return %arg0, %c0_i32 : i32, i32
  }
}

</mosaic_0001>

<bundles_post_ra>
// kernel: tpu_custom_call.1
= control target key start
LH: loop header
LB: loop body
LE: loop exit
PB: predicated region body
PF: predicated region fallthrough
CT: control target
= control target key end

     0   :  { %s2630_s0 = inlined_call_operand.hbm [shape: bf16[32,32], index: 0, kind: input, shape index: {}]   ;;  %s2631_s1 = inlined_call_operand.hbm [shape: bf16[32,128], index: 1, kind: input, shape index: {}]   ;;  %s2632_s2 = inlined_call_operand.hbm [shape: bf16[128,128], index: 2, kind: input, shape index: {}]   ;;  %s2633_s3 = inlined_call_operand.hbm [shape: bf16[128,256], index: 3, kind: input, shape index: {}]   ;;  %s2634_s4 = inlined_call_operand.hbm [shape: bf16[256,128], index: 4, kind: input, shape index: {}]   ;;  %s2635_s5 = inlined_call_operand.hbm [shape: bf16[128,128], index: 5, kind: input, shape index: {}]   ;;  %s2636_s6 = inlined_call_operand.hbm [shape: bf16[128,128], index: 6, kind: input, shape index: {}]   ;;  %s2637_s7 = inlined_call_operand.vmem [shape: f32[1,128], index: 7, kind: input, shape index: {}]   ;;  %s2638_s8 = inlined_call_operand.vmem [shape: f32[1,128], index: 8, kind: input, shape index: {}]   ;;  %s2639_s9 = inlined_call_operand.vmem [shape: f32[1,256], index: 9, kind: input, shape index: {}]   ;;  %s2640_s10 = inlined_call_operand.vmem [shape: f32[1,128], index: 10, kind: input, shape index: {}]   ;;  %s2641_s11 = inlined_call_operand.vmem [shape: f32[1,128], index: 11, kind: input, shape index: {}]   ;;  %s2642_s12 = inlined_call_operand.vmem [shape: f32[1,128], index: 12, kind: input, shape index: {}]   ;;  %s2643_s13 = inlined_call_operand.hbm [shape: f32[32,128], index: 13, kind: output, shape index: {}]  }
   0x1   :  { %2651 = sst [smem:[#allocation20_spill]] %s2631_s1 }
   0x2   :  { %2652 = sst [smem:[#allocation21_spill]] %s2639_s9 }
   0x3   :  { %2653 = sst [smem:[#allocation22_spill]] %s2640_s10 }
   0x4   :  { %2654 = sst [smem:[#allocation23_spill]] %s2641_s11 }
   0x5   :  { %2655 = sst [smem:[#allocation24_spill]] %s2642_s12 }
   0x6   :  { %2656 = sst [smem:[#allocation25_spill]] %s2643_s13 }
   0x7   :  { %18 = vsyncpa [#allocation3], 0 }
   0x8   :  { %20 = vsyncpa [#allocation3 + $0x1], 0 }
   0x9   :  { %21 = vsyncpa [#allocation6], 0 }
   0xa   :  { %22 = vsyncpa [#allocation9], 0 }
   0xb   :  { %23 = vsyncpa [#allocation12], 0 }
   0xc   :  { %24 = vsyncpa [#allocation4], 0 }
   0xd   :  { %26 = vsyncpa [#allocation4 + $0x1], 0  ;;  %s2238_s25 = smov 0   ;;  %s2240_s26 = smov 0  }
   0xe   :  { %s2242_s27 = smov 0   ;;  %s2244_s28 = smov 0  }
   0xf LB: > { %s2151_s29 = smov [#allocation5]   ;;  %s2259_s14 = sadd.s32 4294967295, %s2149_s28   ;;  %s2149_s28 = sphi %s2244_s28, %s2687_s28   ;;  %s2145_s27 = sphi %s2242_s27, %s2686_s27   ;;  %s2141_s26 = sphi %s2240_s26, %s2685_s26   ;;  %s2137_s25 = sphi %s2238_s25, %s2684_s25  }
  0x10   : > { %s353_s30 = sshll.u32 %s2151_s29, 4  ;;  %p1470_p0 = scmp.ge.s32.totalorder %s2149_s28, 1  ;;  %s2264_s30 = int_to_ptr.vmem [resolvable:$true] %s353_s30 }
  0x11   : > { %p2647_p1 = scmp.eq.s32.totalorder %s2259_s14, 0  ;;  %p341_p2 = scmp.lt.s32.totalorder %s2149_s28, 3 }
  0x12   : > { %s2152_s16 = smov [#allocation8]   ;;  %s2153_s19 = smov [#allocation11]  }
  0x13   : > { %p2266_p3 = pnand %p1470_p0, %p341_p2  ;;  %s379_s17 = sshll.u32 %s2152_s16, 4  ;;  %s2279_s17 = int_to_ptr.vmem [resolvable:$true] %s379_s17 }
  0x14   : > { %s2281_s20 = sshll.u32 %s2153_s19, 4  ;;  %s2659_s1 = sld [smem:[#allocation20_spill]]  ;;  %s406_s20 = int_to_ptr.vmem [resolvable:$true] %s2281_s20 }
  0x15   : > { %s2657_s15 = scalar_select %p2266_p3, 1, 0 }
  0x16   : > { %p1710_p5 = pneg %p2266_p3 }
  0x18   : > { %p2275_p6 = pnand %p1710_p5, %p2647_p1 }
  0x1a   : > { %s1873_s23 = scalar_lea.hbm %s2659_s1, 256  ;;  %p2291_p8 = pneg %p2275_p6 }
  0x1b   : > { %p1874_p7 = scmp.ne.s32.totalorder %s2659_s1, %s1873_s23  ;;  %p1880_p11 = scmp.lt.u32.totalorder %s1873_s23, %s2659_s1 }
  0x1d   : > { %p1876_p9 = pnand %p2291_p8, %p1874_p7 }
  0x1f   : > { %p1877_p10 = pneg %p1876_p9 }
  0x21   : > { %p1882_p12 = pnand %p1880_p11, %p1877_p10 }
  0x23   : > { %1885 = shalt.err (!%p1882_p12)
}
  0x24   : > { %s1886_s21 = scalar_lea.vmem %s2264_s30, 256  ;;  %p1894_p5 = scmp.lt.s32.totalorder %s2264_s30, %s2264_s30 }
  0x25   : > { %p1887_p13 = scmp.ne.s32.totalorder %s2264_s30, %s1886_s21  ;;  %p1895_p4 = scmp.lt.s32.totalorder %s1886_s21, %s1886_s21 }
  0x27   : > { %p1889_p0 = pnand %p1887_p13, %p2291_p8  ;;  %p1896_p7 = por %p1895_p4, %p1894_p5 }
  0x29   : > { %p1890_p2 = pneg %p1889_p0 }
  0x2b   : > { %p1897_p9 = pnand %p1896_p7, %p1890_p2 }
  0x2d   : > { %1900 = shalt.err (!%p1897_p9)
}
  0x2e   : > { %s2645_s22 = smov 64   ;;  %s2649_s13 = smov 4  }
  0x2f   : > { %1713 = dma.hbm_to_vmem [thread:$0]  (!%p2275_p6), %s2659_s1, 256, %s2264_s30, [#allocation6], %s2645_s22, %s2645_s22, %s2649_s13  }
  0x30   : > { %s1901_s21 = scalar_lea.hbm %s2633_s3, 2048 }
  0x31   : > { %p1902_p4 = scmp.ne.s32.totalorder %s2633_s3, %s1901_s21  ;;  %p1908_p12 = scmp.lt.u32.totalorder %s1901_s21, %s2633_s3 }
  0x33   : > { %p1904_p10 = pnand %p1902_p4, %p2291_p8 }
  0x35   : > { %p1905_p11 = pneg %p1904_p10 }
  0x37   : > { %p1910_p13 = pnand %p1908_p12, %p1905_p11 }
  0x39   : > { %1913 = shalt.err (!%p1910_p13)
}
  0x3a   : > { %s1914_s30 = scalar_lea.vmem %s2279_s17, 2048  ;;  %p1922_p7 = scmp.lt.s32.totalorder %s2279_s17, %s2279_s17 }
  0x3b   : > { %p1915_p0 = scmp.ne.s32.totalorder %s2279_s17, %s1914_s30  ;;  %p1923_p9 = scmp.lt.s32.totalorder %s1914_s30, %s1914_s30 }
  0x3d   : > { %p1917_p2 = pnand %p1915_p0, %p2291_p8  ;;  %p1924_p4 = por %p1923_p9, %p1922_p7 }
  0x3f   : > { %p1918_p5 = pneg %p1917_p2 }
  0x41   : > { %p1925_p10 = pnand %p1924_p4, %p1918_p5 }
  0x43   : > { %1928 = shalt.err (!%p1925_p10)
}
  0x44   : > { %s2156_s11 = smov 128   ;;  %s2157_s9 = smov 8  }
  0x45   : > { %1719 = dma.hbm_to_vmem [thread:$0]  (!%p2275_p6), %s2633_s3, 2048, %s2279_s17, [#allocation9], %s2156_s11, %s2156_s11, %s2157_s9  }
  0x46   : > { %s1929_s29 = scalar_lea.hbm %s2635_s5, 1024 }
  0x47   : > { %p1930_p11 = scmp.ne.s32.totalorder %s2635_s5, %s1929_s29  ;;  %p1936_p0 = scmp.lt.u32.totalorder %s1929_s29, %s2635_s5 }
  0x49   : > { %p1932_p12 = pnand %p1930_p11, %p2291_p8 }
  0x4b   : > { %p1933_p13 = pneg %p1932_p12 }
  0x4d   : > { %p1938_p2 = pnand %p1936_p0, %p1933_p13 }
  0x4f   : > { %1941 = shalt.err (!%p1938_p2)
}
  0x50   : > { %s1942_s10 = scalar_lea.vmem %s406_s20, 1024  ;;  %p1950_p4 = scmp.lt.s32.totalorder %s406_s20, %s406_s20 }
  0x51   : > { %p1943_p5 = scmp.ne.s32.totalorder %s406_s20, %s1942_s10  ;;  %p1951_p10 = scmp.lt.s32.totalorder %s1942_s10, %s1942_s10 }
  0x53   : > { %p1945_p7 = pnand %p1943_p5, %p2291_p8  ;;  %p1952_p1 = por %p1951_p10, %p1950_p4 }
  0x55   : > { %p1946_p9 = pneg %p1945_p7 }
  0x57   : > { %p1953_p3 = pnand %p1952_p1, %p1946_p9 }
  0x59   : > { %1956 = shalt.err (!%p1953_p3)
}
  0x5a   : > { %s2661_s17 = smov 64   ;;  %s2158_s9 = smov [#allocation7]  }
  0x5b   : > { %1725 = dma.hbm_to_vmem [thread:$0]  (!%p2275_p6), %s2635_s5, 1024, %s406_s20, [#allocation12], %s2661_s17, %s2661_s17, %s2649_s13  }
  0x5c   : > { %s366_s12 = sshll.u32 %s2158_s9, 4  ;;  %s2159_s23 = smov [#allocation10]   ;;  %s367_s12 = int_to_ptr.vmem [resolvable:$true] %s366_s12 }
  0x5d   : > { %s392_s24 = sshll.u32 %s2159_s23, 4  ;;  %s1957_s21 = scalar_lea.hbm %s2632_s2, 1024  ;;  %s393_s24 = int_to_ptr.vmem [resolvable:$true] %s392_s24 }
  0x5e   : > { %p1958_p1 = scmp.ne.s32.totalorder %s2632_s2, %s1957_s21  ;;  %p1964_p12 = scmp.lt.u32.totalorder %s1957_s21, %s2632_s2 }
  0x60   : > { %p1960_p3 = pnand %p1958_p1, %p2291_p8 }
  0x62   : > { %p1961_p11 = pneg %p1960_p3 }
  0x64   : > { %p1966_p13 = pnand %p1964_p12, %p1961_p11 }
  0x66   : > { %1969 = shalt.err (!%p1966_p13)
}
  0x67   : > { %s1970_s20 = scalar_lea.vmem %s367_s12, 1024  ;;  %p1978_p7 = scmp.lt.s32.totalorder %s367_s12, %s367_s12 }
  0x68   : > { %p1971_p0 = scmp.ne.s32.totalorder %s367_s12, %s1970_s20  ;;  %p1979_p9 = scmp.lt.s32.totalorder %s1970_s20, %s1970_s20 }
  0x6a   : > { %p1973_p2 = pnand %p1971_p0, %p2291_p8  ;;  %p1980_p4 = por %p1979_p9, %p1978_p7 }
  0x6c   : > { %p1974_p5 = pneg %p1973_p2 }
  0x6e   : > { %p1981_p10 = pnand %p1980_p4, %p1974_p5 }
  0x70   : > { %1984 = shalt.err (!%p1981_p10)
}
  0x71   : > { %1716 = dma.hbm_to_vmem [thread:$0]  (!%p2275_p6), %s2632_s2, 1024, %s367_s12, [#allocation6], %s2661_s17, %s2661_s17, %s2649_s13  }
  0x72   : > { %s1985_s29 = scalar_lea.hbm %s2634_s4, 2048 }
  0x73   : > { %p1986_p1 = scmp.ne.s32.totalorder %s2634_s4, %s1985_s29  ;;  %p1992_p12 = scmp.lt.u32.totalorder %s1985_s29, %s2634_s4 }
  0x75   : > { %p1988_p3 = pnand %p1986_p1, %p2291_p8 }
  0x77   : > { %p1989_p11 = pneg %p1988_p3 }
  0x79   : > { %p1994_p13 = pnand %p1992_p12, %p1989_p11 }
  0x7b   : > { %1997 = shalt.err (!%p1994_p13)
}
  0x7c   : > { %s1998_s22 = scalar_lea.vmem %s393_s24, 2048  ;;  %p2006_p7 = scmp.lt.s32.totalorder %s393_s24, %s393_s24 }
  0x7d   : > { %p1999_p0 = scmp.ne.s32.totalorder %s393_s24, %s1998_s22  ;;  %p2007_p9 = scmp.lt.s32.totalorder %s1998_s22, %s1998_s22 }
  0x7f   : > { %p2001_p2 = pnand %p1999_p0, %p2291_p8  ;;  %p2008_p4 = por %p2007_p9, %p2006_p7 }
  0x81   : > { %p2002_p5 = pneg %p2001_p2 }
  0x83   : > { %p2009_p10 = pnand %p2008_p4, %p2002_p5 }
  0x85   : > { %2012 = shalt.err (!%p2009_p10)
}
  0x86   : > { %1722 = dma.hbm_to_vmem [thread:$0]  (!%p2275_p6), %s2634_s4, 2048, %s393_s24, [#allocation9], %s2661_s17, %s2661_s17, %s2649_s13  }
  0x87   : > { %s2160_s1 = smov [#allocation13]   ;;  %s2013_s29 = scalar_lea.hbm %s2636_s6, 1024 }
  0x88   : > { %s418_s11 = sshll.u32 %s2160_s1, 4  ;;  %p2014_p1 = scmp.ne.s32.totalorder %s2636_s6, %s2013_s29  ;;  %s419_s11 = int_to_ptr.vmem [resolvable:$true] %s418_s11 }
  0x89   : > { %p2020_p12 = scmp.lt.u32.totalorder %s2013_s29, %s2636_s6 }
  0x8a   : > { %p2016_p3 = pnand %p2014_p1, %p2291_p8 }
  0x8c   : > { %p2017_p11 = pneg %p2016_p3 }
  0x8e   : > { %p2022_p13 = pnand %p2020_p12, %p2017_p11 }
  0x90   : > { %2025 = shalt.err (!%p2022_p13)
}
  0x91   : > { %s2026_s24 = scalar_lea.vmem %s419_s11, 1024  ;;  %p2034_p7 = scmp.lt.s32.totalorder %s419_s11, %s419_s11 }
  0x92   : > { %p2027_p0 = scmp.ne.s32.totalorder %s419_s11, %s2026_s24  ;;  %p2035_p9 = scmp.lt.s32.totalorder %s2026_s24, %s2026_s24 }
  0x94   : > { %p2029_p2 = pnand %p2027_p0, %p2291_p8  ;;  %p2036_p4 = por %p2035_p9, %p2034_p7 }
  0x96   : > { %p2030_p5 = pneg %p2029_p2 }
  0x98   : > { %p2037_p10 = pnand %p2036_p4, %p2030_p5 }
  0x9a   : > { %2040 = shalt.err (!%p2037_p10)
}
  0x9b   : > { %1728 = dma.hbm_to_vmem [thread:$0]  (!%p2275_p6), %s2636_s6, 1024, %s419_s11, [#allocation12], %s2661_s17, %s2661_s17, %s2649_s13  }
  0x9c   : > { %s1469_s18 = sadd.s32 4294967294, %s2149_s28   ;;  %s2425_s16 = sadd.s32 1, %s2149_s28  }
  0x9d   : > { %s36_s20 = ssub.s32 %s2149_s28, %s2425_s16  ;;  %s39_s1 = sadd.s32 1, %s2145_s27 }
  0x9e   : > { %p37_p8 = scmp.eq.s32.totalorder %s36_s20, 0  ;;  %p46_p1 = scmp.ne.s32.totalorder %s2145_s27, %s2141_s26 }
  0x9f   : > { %p47_p3 = scmp.eq.s32.totalorder %s2149_s28, 0  ;;  %p52_p11 = scmp.ne.s32.totalorder %s2141_s26, %s2137_s25 }
  0xa0   : > { %s2436_s9 = scalar_select %p37_p8, %s2145_s27, %s39_s1  }
  0xa1   : > { %p2438_p12 = por %p47_p3, %p46_p1  ;;  %p2663_p13 = scmp.eq.s32.totalorder %s2259_s14, 0 }
  0xa2   : > { %p328_p0 = scmp.eq.s32.totalorder %s2259_s14, 1  ;;  %p334_p2 = scmp.eq.s32.totalorder %s1469_s18, 1 }
  0xa3   : > { %p2444_p6 = por %p2663_p13, %p52_p11  ;;  %p1743_p5 = scmp.lt.s32.totalorder %s2149_s28, 2 }
  0xa4   : > { %s450_s29 = sand.u32 1, %s2145_s27   ;;  %p2451_p7 = por %p328_p0, %p46_p1 }
  0xa5   : > { %p2455_p9 = por %p334_p2, %p52_p11  ;;  %s1478_s30 = sshll.u32 %s450_s29, 3 }
  0xa6   : > { %s2665_s19 = scalar_select %p2451_p7, 1, 0 }
  0xa7   : > { %s2666_s21 = scalar_select %p2455_p9, 1, 0 }
  0xa8   : > { %s1560_s10 = sshll.u32 %s2149_s28, 7  ;;  %s454_s18 = scalar_lea.vmem [#allocation2], %s1478_s30 }
  0xa9   : > { %s2463_s12 = scalar_lea.hbm %s2630_s0, %s1560_s10  ;;  %s461_s20 = sshll.u32 %s454_s18, 4  ;;  %s2465_s20 = int_to_ptr.vmem [resolvable:$true] %s461_s20 }
  0xaa   : > { %p2469_p4 = pnand %p1743_p5, %p2438_p12  ;;  %s2473_s13 = scalar_lea.sflag [#allocation3], %s450_s29 }
  0xab   : > { %s2041_s24 = scalar_lea.hbm %s2463_s12, 128  ;;  %s2046_s23 = scalar_lea.hbm %s2630_s0, 256 }
  0xac   : > { %p2042_p10 = scmp.ne.s32.totalorder %s2463_s12, %s2041_s24  ;;  %p2043_p8 = pneg %p2469_p4 }
  0xad   : > { %p2047_p11 = scmp.lt.u32.totalorder %s2463_s12, %s2630_s0  ;;  %p2048_p12 = scmp.lt.u32.totalorder %s2046_s23, %s2041_s24 }
  0xae   : > { %p2044_p1 = pnand %p2043_p8, %p2042_p10  ;;  %p2050_p0 = scmp.lt.u32.totalorder %s2041_s24, %s2463_s12 }
  0xaf   : > { %p2049_p13 = por %p2048_p12, %p2047_p11 }
  0xb0   : > { %p2045_p3 = pneg %p2044_p1 }
  0xb1   : > { %p2051_p2 = por %p2050_p0, %p2049_p13 }
  0xb3   : > { %p2052_p5 = pnand %p2051_p2, %p2045_p3 }
  0xb5   : > { %2055 = shalt.err (!%p2052_p5)
}
  0xb6   : > { %s2056_s29 = scalar_lea.vmem %s2465_s20, 128  ;;  %s2161_s30 = smov [#allocation2]  }
  0xb7   : > { %p2057_p10 = scmp.ne.s32.totalorder %s2465_s20, %s2056_s29  ;;  %s2061_s10 = sshll.u32 %s2161_s30, 4  ;;  %s2062_s10 = int_to_ptr.vmem [resolvable:$false] %s2061_s10 }
  0xb8   : > { %s2063_s22 = scalar_lea.vmem %s2062_s10, 256  ;;  %p2064_p7 = scmp.lt.s32.totalorder %s2465_s20, %s2062_s10 }
  0xb9   : > { %p2059_p1 = pnand %p2057_p10, %p2043_p8  ;;  %p2065_p11 = scmp.lt.s32.totalorder %s2063_s22, %s2056_s29 }
  0xbb   : > { %p2060_p9 = pneg %p2059_p1  ;;  %p2066_p12 = por %p2065_p11, %p2064_p7 }
  0xbd   : > { %p2067_p13 = pnand %p2066_p12, %p2060_p9 }
  0xbf   : > { %2070 = shalt.err (!%p2067_p13)
}
  0xc0   : > { %s2668_s24 = smov 4   ;;  %p2669_p8 = scmp.ne.s32.totalorder %s2657_s15, 0 }
  0xc1   : > { %1732 = dma.hbm_to_vmem [thread:$0]  (!%p2469_p4), %s2463_s12, 128, %s2465_s20, %s2473_s13, %s2661_s17, %s2661_s17, %s2668_s24  }
  0xc2   : > { %473 = sbr.rel (%p2669_p8) target bundleno = 1872 (0x750), region = 72  ;;  %s2507_s23 = sand.u32 (!%p2669_p8), 1, %s2141_s26  }
  0xc3   : > { %s1482_s18 = sshll.u32 (!%p2669_p8), %s2507_s23, 3  ;;  %s476_s29 = scalar_lea.sflag (!%p2669_p8), [#allocation3], %s2507_s23 }
  0xc4   : > { %s479_s30 = scalar_lea.vmem (!%p2669_p8), [#allocation2], %s1482_s18 }
  0xc9   : > { %2116 = dma.done.wait (%p2444_p6), %s476_s29, 128  }
  0xca   : > { %2118 = vsyncadd (%p2444_p6), %s476_s29, 4294967168  ;;  %p2670_p7 = scmp.eq.s32.totalorder %s2259_s14, 0 }
  0xcc   : > { %2120 = dma.done.wait (%p2670_p7), [#allocation6], 1280   ;;  %p2671_p9 = pmov %p2670_p7 }
  0xcd   : > { %p2672_p4 = pmov %p2670_p7 }
  0xce   : > { %2122 = vsyncadd (%p2671_p9), [#allocation6], 4294966016 }
  0xcf   : > { %2124 = dma.done.wait (%p2672_p4), [#allocation9], 4096   ;;  %p2673_p3 = pmov %p2672_p4 }
  0xd1   : > { %2126 = vsyncadd (%p2673_p3), [#allocation9], 4294963200  ;;  %p2674_p0 = pmov %p2673_p3 }
  0xd3   : > { %2128 = dma.done.wait (%p2674_p0), [#allocation12], 2048   ;;  %p2675_p2 = pmov %p2674_p0 }
  0xd4   : > { %v2162_v0 = vmov 0.0   ;;  %vm2163_vm0 = vmmov 0   ;;  %v1798_v1 = vld [vmem:[#allocation5] sm:$0xff]   ;;  %v1799_v2 = vld [vmem:[#allocation5 + $0x8] sm:$0xff]   ;;  %v1801_v3 = vld [vmem:[#allocation7] sm:$0xff]   ;;  %vm579_vm1 = vcmask 261120  }
  0xd5   : > { %2130 = vsyncadd (%p2675_p2), [#allocation12], 4294965248  ;;  %1614 = vmatprep.subr.bf16.mxu0 %v2162_v0  ;;  %1618 = vmatprep.mubr.msk.bf16.mxu0 %vm2163_vm0, %v2162_v0  ;;  %v1800_v4 = vld [vmem:[%s479_s30] sm:$0xff]   ;;  %v1803_v6 = vld [vmem:[#allocation7 + $0x10] sm:$0xff]   ;;  %v2164_v38 = vmov 0   ;;  %s2676_s1 = sld [smem:[#allocation21_spill]] }
  0xd6   : > { %1622 = vmatprep.subr.bf16.mxu1 %v2162_v0  ;;  %1638 = vmatprep.mubr.msk.bf16.mxu1 %vm2163_vm0, %v2162_v0  ;;  %v1802_v5 = vld [vmem:[#allocation7 + $0x8] sm:$0xff]   ;;  %v1804_v7 = vld [vmem:[#allocation7 + $0x18] sm:$0xff]   ;;  %v1805_v8 = vld [vmem:[#allocation7 + $0x20] sm:$0xff]   ;;  %s2677_s24 = sld [smem:[#allocation22_spill]]  ;;  %s2678_s30 = sld [smem:[#allocation23_spill]] }
  0xd7   : > { %1615 = vmatpush3.bf16.msra.mxu0 %v1798_v1  ;;  %1623 = vmatpush3.bf16.msra.mxu1 %v1801_v3  ;;  %v1806_v9 = vld [vmem:[#allocation7 + $0x28] sm:$0xff]   ;;  %v1807_v10 = vld [vmem:[#allocation7 + $0x30] sm:$0xff]   ;;  %v1808_v11 = vld [vmem:[#allocation7 + $0x38] sm:$0xff]   ;;  %s2679_s17 = sld [smem:[#allocation24_spill]]  ;;  %s1489_s11 = sshll.u32 %s2507_s23, 4 }
  0xd8   : > { %1616 = vmatprep.subr.bf16.mxu0 %v2162_v0  ;;  %1624 = vmatprep.subr.bf16.mxu1 %v2162_v0  ;;  %v1809_v12 = vld [vmem:[#allocation8] ss:$8 sps:$4 sm:$0xff]   ;;  %v1811_v13 = vld [vmem:[#allocation8 + $0x4] ss:$8 sps:$4 sm:$0xff]   ;;  %v1814_v14 = vld [vmem:[#allocation8 + $0x14] ss:$8 sps:$4 sm:$0xff]  }
  0xd9   : > { %v1812_v15 = vld [vmem:[#allocation8 + $0x10] ss:$8 sps:$4 sm:$0xff]   ;;  %v1817_v16 = vld [vmem:[#allocation8 + $0x24] ss:$8 sps:$4 sm:$0xff]   ;;  %v1815_v17 = vld [vmem:[#allocation8 + $0x20] ss:$8 sps:$4 sm:$0xff]  }
  0xda   : > { %v1820_v18 = vld [vmem:[#allocation8 + $0x34] ss:$8 sps:$4 sm:$0xff]   ;;  %v1818_v19 = vld [vmem:[#allocation8 + $0x30] ss:$8 sps:$4 sm:$0xff]   ;;  %v1823_v20 = vld [vmem:[#allocation8 + $0x44] ss:$8 sps:$4 sm:$0xff]  }
  0xdb   : > { %1617 = vmatpush3.bf16.msra.mxu0 %v1799_v2  ;;  %1625 = vmatpush3.bf16.msra.mxu1 %v1802_v5  ;;  %v1821_v21 = vld [vmem:[#allocation8 + $0x40] ss:$8 sps:$4 sm:$0xff]   ;;  %v1826_v22 = vld [vmem:[#allocation8 + $0x54] ss:$8 sps:$4 sm:$0xff]   ;;  %v1824_v23 = vld [vmem:[#allocation8 + $0x50] ss:$8 sps:$4 sm:$0xff]  }
  0xdc   : > { %1626 = vmatprep.subr.bf16.mxu1 %v2162_v0  ;;  %850 = vmatprep.subr.bf16.mxu0 %v1811_v13  ;;  %v1490_v24 = vld [vmem:[%s2637_s7] ss:$0 sm:$0xff]  ;;  %v1829_v34 = vld [vmem:[#allocation8 + $0x64] ss:$8 sps:$4 sm:$0xff]   ;;  %v1832_v36 = vld [vmem:[#allocation8 + $0x74] ss:$8 sps:$4 sm:$0xff]  }
  0xdd   : > { %v1827_v35 = vld [vmem:[#allocation8 + $0x60] ss:$8 sps:$4 sm:$0xff]   ;;  %v1830_v37 = vld [vmem:[#allocation8 + $0x70] ss:$8 sps:$4 sm:$0xff]   ;;  %s1561_s12 = sshll.u32 %s2259_s14, 8  ;;  %s545_s20 = scalar_lea.vmem [#allocation14], %s1489_s11 }
  0xde   : > { %1619 = vmatmul.mubr.msk.bf16.vlgmr.msra.gmra.mrb[0].mxu0 %vm579_vm1, %v1800_v4  ;;  %v1833_v39 = vld [vmem:[#allocation10 + $0x40] sm:$0xff]   ;;  %v1835_v41 = vld [vmem:[#allocation10 + $0x48] sm:$0xff]   ;;  %v1837_v43 = vld [vmem:[#allocation10 + $0x50] sm:$0xff]   ;;  %s1326_s29 = scalar_lea.sflag [#allocation4], %s2507_s23  ;;  %p2681_p5 = scmp.ne.s32.totalorder %s2665_s19, 0 }
  0xdf   : > { %1627 = vmatpush3.bf16.msra.mxu1 %v1803_v6  ;;  %851 = vmatpush1.bf16.msra.mxu0 %v1809_v12  ;;  %v1834_v40 = vld [vmem:[#allocation10] sm:$0xff]   ;;  %v1836_v42 = vld [vmem:[#allocation10 + $0x8] sm:$0xff]   ;;  %v1838_v44 = vld [vmem:[#allocation10 + $0x10] sm:$0xff]   ;;  %s2165_s14 = smov [#allocation14]  }
  0xe0   : > { %1628 = vmatprep.subr.bf16.mxu1 %v2162_v0  ;;  %852 = vmatprep.subr.bf16.mxu0 %v1814_v14  ;;  %v1839_v45 = vld [vmem:[#allocation10 + $0x58] sm:$0xff]   ;;  %v1841_v47 = vld [vmem:[#allocation10 + $0x60] sm:$0xff]   ;;  %v1843_v49 = vld [vmem:[#allocation10 + $0x68] sm:$0xff]   ;;  %s2075_s15 = sshll.u32 %s2165_s14, 4  ;;  %s2076_s15 = int_to_ptr.vmem [resolvable:$false] %s2075_s15 }
  0xe1   : > { %882 = vmatprep.mubr.bf16.mxu0 %v2164_v38  ;;  %v1840_v46 = vld [vmem:[#allocation10 + $0x18] sm:$0xff]   ;;  %v1842_v48 = vld [vmem:[#allocation10 + $0x20] sm:$0xff]   ;;  %v1844_v60 = vld [vmem:[#allocation10 + $0x28] sm:$0xff]   ;;  %s2077_s13 = scalar_lea.vmem %s2076_s15, 512 }
  0xe2   : > { %v1495_v50 = vld [vmem:[%s2638_s8] ss:$0 sm:$0xff]  ;;  %v1845_v61 = vld [vmem:[#allocation10 + $0x70] sm:$0xff]   ;;  %v1847_v63 = vld [vmem:[#allocation10 + $0x78] sm:$0xff]  }
  0xe3   : > { %1629 = vmatpush3.bf16.msra.mxu1 %v1804_v7  ;;  %853 = vmatpush1.bf16.msra.mxu0 %v1812_v15  ;;  %v1846_v62 = vld [vmem:[#allocation10 + $0x30] sm:$0xff]   ;;  %v1848_v1 = vld [vmem:[#allocation10 + $0x38] sm:$0xff]   ;;  %v1849_v2 = vld [vmem:[#allocation11] sm:$0xff]   ;;  %v760_v7 = vlaneseq }
  0xe4   : > { %1630 = vmatprep.subr.bf16.mxu1 %v2162_v0  ;;  %854 = vmatprep.subr.bf16.mxu0 %v1817_v16  ;;  %v1850_v3 = vld [vmem:[#allocation11 + $0x8] sm:$0xff]   ;;  %v1851_v4 = vld [vmem:[#allocation11 + $0x10] sm:$0xff]   ;;  %v1852_v5 = vld [vmem:[#allocation11 + $0x18] sm:$0xff]  }
  0xe5   : > { %v1853_v6 = vld [vmem:[#allocation11 + $0x20] sm:$0xff]  }
  0xe6   : > { %v1520_v38 = vld [vmem:[%s2677_s24] ss:$0 sm:$0xff]  ;;  %s2680_s24 = sld [smem:[#allocation25_spill]] }
  0xe7   : > { %1631 = vmatpush3.bf16.msra.mxu1 %v1805_v8  ;;  %855 = vmatpush1.bf16.msra.mxu0 %v1815_v17  ;;  %v761_v8 = vshrl.u32 %v760_v7, 7 }
  0xe8   : > { %1632 = vmatprep.subr.bf16.mxu1 %v2162_v0  ;;  %856 = vmatprep.subr.bf16.mxu0 %v1820_v18 }
  0xeb   : > { %1633 = vmatpush3.bf16.msra.mxu1 %v1806_v9  ;;  %857 = vmatpush1.bf16.msra.mxu0 %v1818_v19  ;;  %v762_v9 = vsub.s32 0, %v761_v8 }
  0xec   : > { %1634 = vmatprep.subr.bf16.mxu1 %v2162_v0  ;;  %858 = vmatprep.subr.bf16.mxu0 %v1823_v20  ;;  %s2584_s18 = scalar_lea.hbm %s2680_s24, %s1561_s12 }
  0xef   : > { %1635 = vmatpush3.bf16.msra.mxu1 %v1807_v10  ;;  %859 = vmatpush1.bf16.msra.mxu0 %v1821_v21  ;;  %v758_v10 = vld [vmem:[%s2676_s1] sm:$0x3]  ;;  %s1339_s1 = sshll.u32 %s545_s20, 4  ;;  %s2586_s1 = int_to_ptr.vmem [resolvable:$true] %s1339_s1 }
  0xf0   : > { %1636 = vmatprep.subr.bf16.mxu1 %v2162_v0  ;;  %860 = vmatprep.subr.bf16.mxu0 %v1826_v22  ;;  %v763_v12 = vrot.slane %v758_v10, %v762_v9  ;;  %p2078_p11 = scmp.lt.s32.totalorder %s2586_s1, %s2076_s15 }
  0xf3   : > { %1637 = vmatpush3.bf16.msra.mxu1 %v1808_v11  ;;  %861 = vmatpush1.bf16.msra.mxu0 %v1824_v23  ;;  %v766_v11 = vsub.s32 1, %v761_v8 }
  0xf4   : > { %862 = vmatprep.subr.bf16.mxu0 %v1829_v34  ;;  %1574 = vmatprep.subr.bf16.mxu1 %v1833_v39  ;;  %v1860_v34 = vld [vmem:[#allocation13 + $0x18] sm:$0xff]  }
  0xf5   : > { %v767_v13 = vrot.slane %v758_v10, %v766_v11 }
  0xf7   : > { %863 = vmatpush1.bf16.msra.mxu0 %v1827_v35  ;;  %v1861_v35 = vld [vmem:[#allocation13 + $0x20] sm:$0xff]  }
  0xf8   : > { %864 = vmatprep.subr.bf16.mxu0 %v1832_v36  ;;  %v1862_v36 = vld [vmem:[#allocation13 + $0x28] sm:$0xff]  }
  0xfb   : > { %865 = vmatpush1.bf16.msra.mxu0 %v1830_v37 }
  0xfc   : > { %1642 = vmatprep.subr.bf16.mxu0 %v2162_v0 }
 0x1b1   : > { %v617_v25 = vpop.f32.mrb[0].mxu0 }
 0x1b2   : > { %v618_v26 = vadd.f32 %v1490_v24, %v617_v25  ;;  %v1620_v27 = vpop.f32.mrb[1].mxu0 }
 0x1b3   : > { %v620_v28 = vpop.f32.mrb[2].mxu0 }
 0x1b4   : > { %v621_v29 = vadd.f32 %v1490_v24, %v620_v28  ;;  %v1621_v30 = vpop.f32.mrb[3].mxu0  ;;  %v624_v31 = vmax.f32 %v618_v26, 0.0  ;;  %v1854_v28 = vld [vmem:[#allocation11 + $0x28] sm:$0xff]  }
 0x1b5   : > { %v1856_v30 = vld [vmem:[#allocation11 + $0x38] sm:$0xff]  }
 0x1b6   : > { %v625_v32 = vmax.f32 %v621_v29, 0.0  ;;  %v1855_v29 = vld [vmem:[#allocation11 + $0x30] sm:$0xff]  }
 0x1b8   : > { %v626_v33 = vpack.c.bf16 %v625_v32, %v624_v31  ;;  %v1857_v31 = vld [vmem:[#allocation13] sm:$0xff]   ;;  %v1858_v32 = vld [vmem:[#allocation13 + $0x8] sm:$0xff]  }
 0x1ba   : > { %1639 = vmatmul.mubr.bf16.vlgmr.msra.gmra.mrb[0].mxu1 %v626_v33  ;;  %v1859_v33 = vld [vmem:[#allocation13 + $0x10] sm:$0xff]  }
 0x1bb   : > { %1575 = vmatpush3.bf16.msra.mxu1 %v1834_v40 }
 0x1bc   : > { %1576 = vmatprep.subr.bf16.mxu1 %v1835_v41 }
 0x1bf   : > { %1577 = vmatpush3.bf16.msra.mxu1 %v1836_v42 }
 0x1c0   : > { %1578 = vmatprep.subr.bf16.mxu1 %v1837_v43 }
 0x1c3   : > { %1579 = vmatpush3.bf16.msra.mxu1 %v1838_v44 }
 0x1c4   : > { %1580 = vmatprep.subr.bf16.mxu1 %v1839_v45 }
 0x1c7   : > { %1581 = vmatpush3.bf16.msra.mxu1 %v1840_v46 }
 0x1c8   : > { %1582 = vmatprep.subr.bf16.mxu1 %v1841_v47 }
 0x1cb   : > { %1583 = vmatpush3.bf16.msra.mxu1 %v1842_v48 }
 0x1cc   : > { %1584 = vmatprep.subr.bf16.mxu1 %v1843_v49  ;;  %v1863_v49 = vld [vmem:[#allocation13 + $0x30] sm:$0xff]  }
 0x1cf   : > { %1585 = vmatpush3.bf16.msra.mxu1 %v1844_v60 }
 0x1d0   : > { %1586 = vmatprep.subr.bf16.mxu1 %v1845_v61 }
 0x1d3   : > { %1587 = vmatpush3.bf16.msra.mxu1 %v1846_v62 }
 0x1d4   : > { %1588 = vmatprep.subr.bf16.mxu1 %v1847_v63 }
 0x1d7   : > { %1589 = vmatpush3.bf16.msra.mxu1 %v1848_v1 }
 0x1d8   : > { %1662 = vmatprep.subr.bf16.mxu1 %v2162_v0 }
 0x28d   : > { %v732_v51 = vpop.f32.mrb[0].mxu1 }
 0x28e   : > { %v733_v52 = vadd.f32 %v1495_v50, %v732_v51  ;;  %v1640_v53 = vpop.f32.mrb[1].mxu1  ;;  %v1537_v51 = vld [vmem:[%s2678_s30] ss:$0 sm:$0xff]  ;;  %s2071_s30 = scalar_lea.vmem %s2586_s1, 256 }
 0x28f   : > { %v735_v54 = vpop.f32.mrb[2].mxu1  ;;  %p2072_p6 = scmp.ne.s32.totalorder %s2586_s1, %s2071_s30  ;;  %p2079_p12 = scmp.lt.s32.totalorder %s2077_s13, %s2071_s30 }
 0x290   : > { %v736_v55 = vadd.f32 %v1495_v50, %v735_v54  ;;  %v1641_v56 = vpop.f32.mrb[3].mxu1  ;;  %v739_v57 = vmax.f32 %v733_v52, 0.0  ;;  %v1864_v50 = vld [vmem:[#allocation13 + $0x38] sm:$0xff]  }
 0x291   : > { %p2073_p10 = pnand %p2072_p6, %p2681_p5  ;;  %p2080_p13 = por %p2079_p12, %p2078_p11 }
 0x292   : > { %v740_v58 = vmax.f32 %v736_v55, 0.0 }
 0x293   : > { %p2074_p1 = pneg %p2073_p10 }
 0x294   : > { %v741_v59 = vpack.c.bf16 %v740_v58, %v739_v57 }
 0x295   : > { %p2081_p8 = pnand %p2080_p13, %p2074_p1 }
 0x296   : > { %883 = vmatmul.mubr.bf16.vlgmr.msra.gmra.mrb[4].mxu0 %v741_v59 }
 0x297   : > { %1658 = vmatprep.mubr.msk.bf16.mxu0 %vm2163_vm0, %v2162_v0  ;;  %1643 = vmatpush3.bf16.msra.mxu0 %v1849_v2 }
 0x298   : > { %1644 = vmatprep.subr.bf16.mxu0 %v2162_v0 }
 0x29b   : > { %1645 = vmatpush3.bf16.msra.mxu0 %v1850_v3 }
 0x29c   : > { %1646 = vmatprep.subr.bf16.mxu0 %v2162_v0 }
 0x29f   : > { %1647 = vmatpush3.bf16.msra.mxu0 %v1851_v4 }
 0x2a0   : > { %1648 = vmatprep.subr.bf16.mxu0 %v2162_v0 }
 0x2a3   : > { %1649 = vmatpush3.bf16.msra.mxu0 %v1852_v5 }
 0x2a4   : > { %1650 = vmatprep.subr.bf16.mxu0 %v2162_v0 }
 0x2a7   : > { %1651 = vmatpush3.bf16.msra.mxu0 %v1853_v6 }
 0x2a8   : > { %1652 = vmatprep.subr.bf16.mxu0 %v2162_v0 }
 0x2ab   : > { %1653 = vmatpush3.bf16.msra.mxu0 %v1854_v28 }
 0x2ac   : > { %1654 = vmatprep.subr.bf16.mxu0 %v2162_v0 }
 0x2af   : > { %1655 = vmatpush3.bf16.msra.mxu0 %v1855_v29 }
 0x2b0   : > { %1656 = vmatprep.subr.bf16.mxu0 %v2162_v0 }
 0x2b3   : > { %1657 = vmatpush3.bf16.msra.mxu0 %v1856_v30 }
 0x369   : > { %v884_v14 = vpop.f32.mrb[4].mxu0 }
 0x36a   : > { %v885_v15 = vadd.f32 %v884_v14, %v763_v12  ;;  %v886_v16 = vpop.f32.mrb[5].mxu0 }
 0x36b   : > { %v887_v17 = vadd.f32 %v886_v16, %v767_v13  ;;  %v888_v18 = vpop.f32.mrb[6].mxu0 }
 0x36c   : > { %v889_v19 = vadd.f32 %v888_v18, %v763_v12  ;;  %v890_v20 = vpop.f32.mrb[7].mxu0  ;;  %v893_v22 = vmax.f32 %v885_v15, 0.0 }
 0x36d   : > { %v891_v21 = vadd.f32 %v890_v20, %v767_v13  ;;  %v894_v24 = vmax.f32 %v887_v17, 0.0 }
 0x36e   : > { %v895_v23 = vmax.f32 %v889_v19, 0.0 }
 0x36f   : > { %v896_v25 = vmax.f32 %v891_v21, 0.0 }
 0x370   : > { %v897_v26 = vpack.c.bf16 %v895_v23, %v893_v22 }
 0x371   : > { %v898_v27 = vpack.c.bf16 %v896_v25, %v894_v24 }
 0x373   : > { %1066 = vmatprep.mubr.bf16.mxu1 %v898_v27 }
 0x374   : > { %1067 = vmatmul.mubr.bf16.vlgmr.msra.gmra.mrb[4].mxu1 %v897_v26 }
 0x375   : > { %1678 = vmatprep.mubr.msk.bf16.mxu1 %vm2163_vm0, %v2162_v0  ;;  %1663 = vmatpush3.bf16.msra.mxu1 %v1857_v31 }
 0x376   : > { %1664 = vmatprep.subr.bf16.mxu1 %v2162_v0 }
 0x379   : > { %1665 = vmatpush3.bf16.msra.mxu1 %v1858_v32 }
 0x37a   : > { %1666 = vmatprep.subr.bf16.mxu1 %v2162_v0 }
 0x37d   : > { %1667 = vmatpush3.bf16.msra.mxu1 %v1859_v33 }
 0x37e   : > { %1668 = vmatprep.subr.bf16.mxu1 %v2162_v0 }
 0x381   : > { %1669 = vmatpush3.bf16.msra.mxu1 %v1860_v34 }
 0x382   : > { %1670 = vmatprep.subr.bf16.mxu1 %v2162_v0 }
 0x385   : > { %1671 = vmatpush3.bf16.msra.mxu1 %v1861_v35 }
 0x386   : > { %1672 = vmatprep.subr.bf16.mxu1 %v2162_v0 }
 0x389   : > { %1673 = vmatpush3.bf16.msra.mxu1 %v1862_v36 }
 0x38a   : > { %1674 = vmatprep.subr.bf16.mxu1 %v2162_v0 }
 0x38d   : > { %1675 = vmatpush3.bf16.msra.mxu1 %v1863_v49 }
 0x38e   : > { %1676 = vmatprep.subr.bf16.mxu1 %v2162_v0  ;;  %v1546_v0 = vld [vmem:[%s2679_s17] ss:$0 sm:$0xff] }
 0x391   : > { %1677 = vmatpush3.bf16.msra.mxu1 %v1864_v50 }
 0x447   : > { %v1590_v37 = vpop.f32.mrb[4].mxu1 }
 0x448   : > { %v1591_v39 = vpop.f32.mrb[5].mxu1 }
 0x449   : > { %v1592_v40 = vadd.f32 %v1591_v39, %v1590_v37  ;;  %v1593_v41 = vpop.f32.mrb[6].mxu1 }
 0x44a   : > { %v1594_v42 = vpop.f32.mrb[7].mxu1 }
 0x44b   : > { %v1069_v43 = vadd.f32 %v1592_v40, %v1520_v38  ;;  %v1595_v44 = vadd.f32 %v1594_v42, %v1593_v41 }
 0x44d   : > { %v1072_v45 = vadd.f32 %v1595_v44, %v1520_v38  ;;  %v1075_v46 = vmax.f32 %v1069_v43, 0.0 }
 0x44f   : > { %v1076_v47 = vmax.f32 %v1072_v45, 0.0 }
 0x451   : > { %v1077_v48 = vpack.c.bf16 %v1076_v47, %v1075_v46 }
 0x453   : > { %1659 = vmatmul.mubr.bf16.vlgmr.msra.gmra.mrb[8].mxu0 %v1077_v48 }
 0x526   : > { %v1183_v52 = vpop.f32.mrb[8].mxu0 }
 0x527   : > { %v1184_v53 = vadd.f32 %v1537_v51, %v1183_v52  ;;  %v1660_v54 = vpop.f32.mrb[9].mxu0 }
 0x528   : > { %v1186_v55 = vpop.f32.mrb[10].mxu0 }
 0x529   : > { %v1187_v56 = vadd.f32 %v1537_v51, %v1186_v55  ;;  %v1661_v57 = vpop.f32.mrb[11].mxu0  ;;  %v1190_v58 = vmax.f32 %v1184_v53, 0.0 }
 0x52b   : > { %v1191_v59 = vmax.f32 %v1187_v56, 0.0 }
 0x52d   : > { %v1192_v60 = vpack.c.bf16 %v1191_v59, %v1190_v58 }
 0x52f   : > { %1679 = vmatmul.mubr.bf16.vlgmr.msra.gmra.mrb[8].mxu1 %v1192_v60 }
 0x602   : > { %v1298_v61 = vpop.f32.mrb[8].mxu1 }
 0x603   : > { %v1299_v62 = vadd.f32 %v1546_v0, %v1298_v61  ;;  %v1680_v63 = vpop.f32.mrb[9].mxu1 }
 0x604   : > { %v1301_v1 = vpop.f32.mrb[10].mxu1 }
 0x605   : > { %1305 = vmax.xlane.f32.xlu0 %v1299_v62  ;;  %v1681_v2 = vpop.f32.mrb[11].mxu1  ;;  %v1302_v3 = vadd.f32 %v1546_v0, %v1301_v1 }
 0x609   : > { %1307 = vmax.xlane.f32.xlu0 %v1302_v3 }
 0x692   : > { %v1306_v4 = vpop.xlane.xlu0 %1305 }
 0x693   : > { %v1309_v5 = vsub.f32 %v1299_v62, %v1306_v4 }
 0x695   : > { %v1311_v6 = vmul.f32 1.442695, %v1309_v5 }
 0x696   : > { %v1308_v7 = vpop.xlane.xlu0 %1307 }
 0x697   : > { %1865 = vpow2.f32 %v1311_v6  ;;  %v1310_v8 = vsub.f32 %v1302_v3, %v1308_v7 }
 0x699   : > { %v1313_v9 = vmul.f32 1.442695, %v1310_v8 }
 0x69b   : > { %1867 = vpow2.f32 %v1313_v9 }
 0x6a1   : > { %v1866_v10 = vpop.eup %1865 }
 0x6a2   : > { %1315 = vadd.xlane.f32.xlu1 %v1866_v10 }
 0x6a5   : > { %v1868_v11 = vpop.eup %1867 }
 0x6a6   : > { %1317 = vadd.xlane.f32.xlu1 %v1868_v11 }
 0x72f   : > { %v1316_v12 = vpop.xlane.xlu1 %1315 }
 0x730   : > { %1869 = vrcp.f32 %v1316_v12 }
 0x733   : > { %v1318_v13 = vpop.xlane.xlu1 %1317 }
 0x734   : > { %1871 = vrcp.f32 %v1318_v13 }
 0x73a   : > { %v1870_v14 = vpop.eup %1869 }
 0x73b   : > { %v1321_v15 = vmul.f32 %v1870_v14, %v1866_v10 }
 0x73d   : > { %1323 = vst [vmem:[%s545_s20] sm:$0xff] %v1321_v15 }
 0x73e   : > { %v1872_v16 = vpop.eup %1871 }
 0x73f   : > { %v1322_v17 = vmul.f32 %v1872_v16, %v1868_v11 }
 0x741   : > { %1324 = vst [vmem:[%s545_s20 + $0x8] sm:$0xff] %v1322_v17 }
 0x742   : > { %2084 = shalt.err (!%p2081_p8)
}
 0x743   : > { %s2085_s17 = scalar_lea.hbm %s2584_s18, 256  ;;  %s2089_s20 = scalar_lea.hbm %s2680_s24, 512 }
 0x744   : > { %p2086_p7 = scmp.ne.s32.totalorder %s2584_s18, %s2085_s17  ;;  %p2090_p3 = scmp.lt.u32.totalorder %s2584_s18, %s2680_s24 }
 0x745   : > { %p2091_p0 = scmp.lt.u32.totalorder %s2089_s20, %s2085_s17  ;;  %p2093_p6 = scmp.lt.u32.totalorder %s2085_s17, %s2584_s18 }
 0x746   : > { %p2087_p9 = pnand %p2086_p7, %p2681_p5 }
 0x747   : > { %p2092_p2 = por %p2091_p0, %p2090_p3 }
 0x748   : > { %p2088_p4 = pneg %p2087_p9 }
 0x749   : > { %p2094_p10 = por %p2093_p6, %p2092_p2 }
 0x74b   : > { %p2095_p1 = pnand %p2094_p10, %p2088_p4 }
 0x74d   : > { %2098 = shalt.err (!%p2095_p1)
}
 0x74e   : > { %s2166_s30 = smov 128   ;;  %s2167_s14 = smov 8  }
 0x74f   : > { %1708 = dma.vmem_to_hbm [thread:$0]  (%p2681_p5), %s2586_s1, 256, %s2584_s18, %s1326_s29, %s2166_s30, %s2166_s30, %s2167_s14  }
 0x750 PF: > { %s1354_s15 = sand.u32 1, %s2137_s25   ;;  %p2682_p11 = scmp.ne.s32.totalorder %s2666_s21, 0 }
 0x751   : > { %p2683_p12 = scmp.ge.s32.totalorder %s2149_s28, 2  ;;  %s1355_s13 = scalar_lea.sflag [#allocation4], %s1354_s15 }
 0x753   : > { %p1734_p13 = pnand %p2683_p12, %p2682_p11 }
 0x755   : > { %2132 = dma.done.wait (!%p1734_p13), %s1355_s13, 256  }
 0x756   : > { %2134 = vsyncadd (!%p1734_p13), %s1355_s13, 4294967040  ;;  %p29_p8 = scmp.ge.s32.totalorder %s2425_s16, 4   ;;  %s2684_s25 = smov %s2141_s26 }
 0x757   : > { %s2685_s26 = smov %s2145_s27  ;;  %s2686_s27 = smov %s2436_s9 }
 0x758   : > { %s2687_s28 = smov %s2425_s16  ;;  %31 = sbr.rel (!%p29_p8) target bundleno = 15 (0xf), region = 141 }
 0x75f   :  { %1360 = vsyncpa [#allocation3], 1 }
 0x760   :  { %1362 = vsyncpa [#allocation3 + $0x1], 1 }
 0x761   :  { %1363 = vsyncpa [#allocation6], 1 }
 0x762   :  { %1364 = vsyncpa [#allocation9], 1 }
 0x763   :  { %1365 = vsyncpa [#allocation12], 1 }
 0x764   :  { %1366 = vsyncpa [#allocation4], 1 }
 0x765   :  { %1368 = vsyncpa [#allocation4 + $0x1], 1 }

</bundles_post_ra>
